<compile_context>
chip_gen: v6e
topology: v6e:2x2x1
jax: 0.10.0
libtpu: 0.0.40
codegen_flags: <defaults>
</compile_context>

<pallas_src>
import math

import jax
import jax.numpy as jnp
from jax.experimental import pallas as pl
from jax.experimental.pallas import tpu as pltpu


_MIN_PALLAS_ELEMS = 1 << 20   # below ~4 MiB of f32, XLA fusion wins on launch overhead
_MAX_LANES = 2048             # lane-dense last dim cap (multiple of 128)


def _out_sum_kernel(x_ref, s_ref, o_ref):
    # Pure VPU elementwise; *0.5 is exact for floats and free under the
    # memory-bound roofline (2 vld / 2 VALU / 1 vst per vreg).
    o_ref[...] = (x_ref[...] + s_ref[...]) * 0.5


def _pick_lanes(n: int):
    """Largest multiple of 128 (<= _MAX_LANES) that exactly divides n, else None."""
    if n <= 0 or n % 128 != 0:
        return None
    m = n // 128
    for k in range(min(m, _MAX_LANES // 128), 0, -1):
        if m % k == 0:
            return 128 * k
    return 128


def _tpu_config():
    """Trace-time per-generation tiling config (buffer bytes, scoped-VMEM limit, v7x?)."""
    try:
        vmem = int(pltpu.get_tpu_info().vmem_capacity_bytes)
    except Exception:
        # Unknown chip: stay inside every generation's scoped-VMEM default.
        return {"buf_bytes": 2 << 20, "vmem_limit": None, "v7x": False}
    if vmem <= (96 << 20):
        # v7x-class: 64 MiB physical VMEM per TC, 32 MiB scoped default.
        # 6 x 4 MiB double-buffered windows = 24 MiB -> fits without flags.
        return {"buf_bytes": 4 << 20, "vmem_limit": None, "v7x": True}
    # v5e / v6e: 128 MiB physical VMEM; raise the scoped limit explicitly so the
    # 24 MiB of windows is accepted on v5e's 16 MiB default as well.
    return {"buf_bytes": 4 << 20, "vmem_limit": 64 << 20, "v7x": False}


def _out_sum_pallas_2d(x2: jax.Array, s2: jax.Array) -> jax.Array:
    rows, lanes = x2.shape
    cfg = _tpu_config()

    elem_bytes = jnp.dtype(x2.dtype).itemsize
    # Row tile from the per-buffer byte budget, rounded down to a multiple of 8
    # (block second-to-last dim must be a multiple of 8 OR the full dim).
    rows_per_buf = max(8, (cfg["buf_bytes"] // (lanes * elem_bytes)) // 8 * 8)
    row_tile = rows if rows <= rows_per_buf else rows_per_buf

    grid = (pl.cdiv(rows, row_tile),)
    spec = pl.BlockSpec((row_tile, lanes), lambda i: (i, 0))

    n = rows * lanes
    cost = pl.CostEstimate(
        flops=2 * n,                       # add + mul
        transcendentals=0,
        bytes_accessed=3 * n * elem_bytes,  # 2 reads + 1 write, HBM-bound
    )

    # On v7x, CORE_PARALLEL actually splits the row-tile axis across the two
    # TensorCores (plain "parallel" measurably does not change codegen).  Fall
    # back to "parallel" if that lowering is rejected, so the kernel always runs.
    semantics_options = []
    if cfg["v7x"] and grid[0] >= 2:
        semantics_options.append((pltpu.CORE_PARALLEL,))
    semantics_options.append(("parallel",))

    last_err = None
    for sem in semantics_options:
        try:
            call = pl.pallas_call(
                _out_sum_kernel,
                out_shape=jax.ShapeDtypeStruct((rows, lanes), x2.dtype),
                grid=grid,
                in_specs=[spec, spec],
                out_specs=spec,
                compiler_params=pltpu.CompilerParams(
                    dimension_semantics=sem,
                    vmem_limit_bytes=cfg["vmem_limit"],
                ),
                cost_estimate=cost,
            )
            return call(x2, s2)
        except Exception as e:  # pragma: no cover - only hit if CORE_PARALLEL rejected
            last_err = e
    raise last_err


def out_sum(x: jax.Array, scale_x: jax.Array, *, use_pallas=None) -> jax.Array:
    """(x + scale_x) / 2, matching PyTorch OutSum.forward semantics."""
    assert x.shape == scale_x.shape, "x and scale_x must have the same shape"

    # PyTorch's `/ 2` is true division: integer/bool inputs produce a float result.
    out_dtype = jnp.result_type(x.dtype, scale_x.dtype)
    if not jnp.issubdtype(out_dtype, jnp.floating):
        out_dtype = jnp.float32
    if x.dtype != out_dtype:
        x = x.astype(out_dtype)
    if scale_x.dtype != out_dtype:
        scale_x = scale_x.astype(out_dtype)

    orig_shape = x.shape
    n = math.prod(orig_shape) if orig_shape else 1
    lanes = _pick_lanes(n)

    if use_pallas is None:
        # Tiny tensors: pallas_call launch + DMA setup dwarfs the HBM traffic.
        use_pallas = n >= _MIN_PALLAS_ELEMS
    if not use_pallas or lanes is None:
        # Ragged sizes (element count not a multiple of 128) go to XLA fusion:
        # for a mem-bound elementwise op that is strictly cheaper than padding
        # (which would add an extra full HBM read+write pass).
        return (x + scale_x) * 0.5

    rows = n // lanes
    out2 = _out_sum_pallas_2d(x.reshape(rows, lanes), scale_x.reshape(rows, lanes))
    return out2.reshape(orig_shape)


if __name__ == "__main__":
    key = jax.random.PRNGKey(0)
    k1, k2, k3, k4, k5, k6 = jax.random.split(key, 6)

    # Primary NCHW test (2, 4, 16, 16): 2048 elements -> exact lane-dense slab,
    # Pallas path forced so the kernel is actually exercised.
    x = jax.random.normal(k1, (2, 4, 16, 16), dtype=jnp.float32)
    scale_x = jax.random.normal(k2, (2, 4, 16, 16), dtype=jnp.float32)
    out = jax.block_until_ready(out_sum(x, scale_x, use_pallas=True))
    ref = (x + scale_x) / 2
    assert out.shape == ref.shape and out.dtype == ref.dtype
    assert jnp.allclose(out, ref, atol=1e-6, rtol=1e-6)

    # Multi-row slab (rows > 1) through the same Pallas path.
    xb = jax.random.normal(k3, (4, 4, 32, 32), dtype=jnp.float32)
    sb = jax.random.normal(k4, (4, 4, 32, 32), dtype=jnp.float32)
    outb = jax.block_until_ready(out_sum(xb, sb, use_pallas=True))
    refb = (xb + sb) / 2
    assert outb.shape == refb.shape
    assert jnp.allclose(outb, refb, atol=1e-6, rtol=1e-6)

    # Ragged element count (not a multiple of 128) dispatches to the XLA path
    # by design (no padding, no extra HBM pass); semantics still match.
    xr = jax.random.normal(k5, (2, 3, 17, 19), dtype=jnp.float32)
    sr = jax.random.normal(k6, (2, 3, 17, 19), dtype=jnp.float32)
    outr = jax.block_until_ready(out_sum(xr, sr, use_pallas=True))
    refr = (xr + sr) / 2
    assert outr.shape == refr.shape
    assert jnp.allclose(outr, refr, atol=1e-6, rtol=1e-6)

    # Integer inputs: true-division semantics -> float output.
    xi = jnp.arange(2 * 4 * 16 * 16, dtype=jnp.int32).reshape(2, 4, 16, 16)
    si = jnp.ones_like(xi)
    outi = jax.block_until_ready(out_sum(xi, si, use_pallas=True))
    refi = (xi.astype(jnp.float32) + si.astype(jnp.float32)) / 2
    assert jnp.issubdtype(outi.dtype, jnp.floating)
    assert jnp.allclose(outi, refi, atol=1e-6, rtol=1e-6)

    print("KERNEL_OK")
</pallas_src>

<mosaic_0001>
module attributes {stable_mosaic.version = 11 : i64} {
  func.func @_out_sum_kernel(%arg0: i32, %arg1: memref<1x2048xf32, #tpu.memory_space<vmem>>, %arg2: memref<1x2048xf32, #tpu.memory_space<vmem>>, %arg3: memref<1x2048xf32, #tpu.memory_space<vmem>>) attributes {dimension_semantics = [#tpu.dimension_semantics<parallel>], iteration_bounds = array<i64: 1>, scalar_prefetch = 0 : i64, scratch_operands = 0 : i64, tpu.core_type = #tpu.core_type<tc>, window_params = [{transform_indices = @transform_0, window_bounds = array<i64: 1, 2048>}, {transform_indices = @transform_1, window_bounds = array<i64: 1, 2048>}, {transform_indices = @transform_2, window_bounds = array<i64: 1, 2048>}]} {
    %c0 = arith.constant 0 : index
    %c0_0 = arith.constant 0 : index
    %0 = vector.load %arg1[%c0, %c0_0] : memref<1x2048xf32, #tpu.memory_space<vmem>>, vector<1x2048xf32>
    %c0_1 = arith.constant 0 : index
    %c0_2 = arith.constant 0 : index
    %1 = vector.load %arg2[%c0_1, %c0_2] : memref<1x2048xf32, #tpu.memory_space<vmem>>, vector<1x2048xf32>
    %2 = arith.addf %0, %1 : vector<1x2048xf32>
    %cst = arith.constant 5.000000e-01 : f32
    %3 = vector.broadcast %cst : f32 to vector<1x2048xf32>
    %4 = arith.mulf %2, %3 : vector<1x2048xf32>
    %c0_3 = arith.constant 0 : index
    %c0_4 = arith.constant 0 : index
    %5 = vector.load %arg3[%c0_3, %c0_4] : memref<1x2048xf32, #tpu.memory_space<vmem>>, vector<1x2048xf32>
    tpu.vector_store %arg3[%c0_3, %c0_4], %4 {strides = array<i32>} : memref<1x2048xf32, #tpu.memory_space<vmem>>, vector<1x2048xf32>,
    return
  }
  func.func @transform_0(%arg0: i32) -> (i32, i32) {
    %c0_i32 = arith.constant 0 : i32
    %c0_i32_0 = arith.constant 0 : i32
    return %arg0, %c0_i32 : i32, i32
  }
  func.func @transform_1(%arg0: i32) -> (i32, i32) {
    %c0_i32 = arith.constant 0 : i32
    %c0_i32_0 = arith.constant 0 : i32
    return %arg0, %c0_i32 : i32, i32
  }
  func.func @transform_2(%arg0: i32) -> (i32, i32) {
    %c0_i32 = arith.constant 0 : i32
    %c0_i32_0 = arith.constant 0 : i32
    return %arg0, %c0_i32 : i32, i32
  }
}

</mosaic_0001>

<bundles_post_ra>
// kernel: tpu_custom_call.1
= control target key start
LH: loop header
LB: loop body
LE: loop exit
PB: predicated region body
PF: predicated region fallthrough
CT: control target
= control target key end

     0   :  { %7 = vsyncpa [#allocation3], 0  ;;  %s158_s0 = inlined_call_operand.hbm [shape: f32[1,2048], index: 0, kind: input, shape index: {}]   ;;  %s159_s1 = inlined_call_operand.hbm [shape: f32[1,2048], index: 1, kind: input, shape index: {}]   ;;  %s160_s2 = inlined_call_operand.hbm [shape: f32[1,2048], index: 2, kind: output, shape index: {}]  }
   0x1   :  { %8 = vsyncpa [#allocation6], 0 }
   0x2   :  { %9 = vsyncpa [#allocation4], 0  ;;  %s131_s9 = smov [#allocation2]   ;;  %s132_s11 = smov [#allocation5]  }
   0x3   :  { %s16_s10 = sshll.u32 %s131_s9, 4  ;;  %s26_s12 = sshll.u32 %s132_s11, 4  ;;  %s17_s10 = int_to_ptr.vmem [resolvable:$true] %s16_s10  ;;  %s27_s12 = int_to_ptr.vmem [resolvable:$true] %s26_s12 }
   0x4   :  { %s73_s13 = scalar_lea.vmem %s17_s10, 256  ;;  %p78_p1 = scmp.lt.s32.totalorder %s17_s10, %s17_s10 }
   0x5   :  { %p74_p0 = scmp.ne.s32.totalorder %s17_s10, %s73_s13  ;;  %p79_p2 = scmp.lt.s32.totalorder %s73_s13, %s73_s13 }
   0x7   :  { %p80_p3 = por %p79_p2, %p78_p1 }
   0x9   :  { %p81_p4 = pnand %p80_p3, %p74_p0 }
   0xb   :  { %84 = shalt.err (!%p81_p4)
}
   0xc   :  { %19 = dma.hbm_to_vmem [thread:$0]  %s158_s0, 256, %s17_s10, [#allocation3]  }
   0xd   :  { %s93_s16 = scalar_lea.vmem %s27_s12, 256  ;;  %p98_p6 = scmp.lt.s32.totalorder %s27_s12, %s27_s12 }
   0xe   :  { %p94_p5 = scmp.ne.s32.totalorder %s27_s12, %s93_s16  ;;  %p99_p7 = scmp.lt.s32.totalorder %s93_s16, %s93_s16 }
  0x10   :  { %p100_p8 = por %p99_p7, %p98_p6 }
  0x12   :  { %p101_p9 = pnand %p100_p8, %p94_p5 }
  0x14   :  { %104 = shalt.err (!%p101_p9)
}
  0x15   :  { %29 = dma.hbm_to_vmem [thread:$0]  %s159_s1, 256, %s27_s12, [#allocation6]  }
  0x16   :  { %125 = dma.done.wait [#allocation3], 256  }
  0x17   :  { %126 = vsyncadd [#allocation3], 4294967040 }
  0x18   :  { %127 = dma.done.wait [#allocation6], 256  }
  0x19   :  { %128 = vsyncadd [#allocation6], 4294967040  ;;  %v36_v0 = vld [vmem:[#allocation2] sm:$0xff]  ;;  %v38_v1 = vld [vmem:[#allocation5] sm:$0xff]  ;;  %s133_s0 = smov [#allocation7]  }
  0x1a   :  { %v37_v2 = vld [vmem:[#allocation2 + $0x8] sm:$0xff]  ;;  %v40_v3 = vadd.f32 %v38_v1, %v36_v0  ;;  %v39_v4 = vld [vmem:[#allocation5 + $0x8] sm:$0xff]  ;;  %s52_s19 = sshll.u32 %s133_s0, 4  ;;  %s53_s19 = int_to_ptr.vmem [resolvable:$true] %s52_s19 }
  0x1b   :  { %v41_v5 = vadd.f32 %v39_v4, %v37_v2  ;;  %s105_s20 = scalar_lea.vmem %s53_s19, 256  ;;  %p110_p11 = scmp.lt.s32.totalorder %s53_s19, %s53_s19 }
  0x1c   :  { %v42_v6 = vmul.f32 0.5, %v40_v3  ;;  %p106_p10 = scmp.ne.s32.totalorder %s53_s19, %s105_s20  ;;  %p111_p12 = scmp.lt.s32.totalorder %s105_s20, %s105_s20 }
  0x1d   :  { %v43_v7 = vmul.f32 0.5, %v41_v5 }
  0x1e   :  { %44 = vst [vmem:[#allocation7] sm:$0xff] %v42_v6  ;;  %p112_p13 = por %p111_p12, %p110_p11 }
  0x1f   :  { %45 = vst [vmem:[#allocation7 + $0x8] sm:$0xff] %v43_v7 }
  0x20   :  { %p113_p0 = pnand %p112_p13, %p106_p10 }
  0x22   :  { %116 = shalt.err (!%p113_p0)
}
  0x23   :  { %55 = dma.vmem_to_hbm [thread:$0]  %s53_s19, 256, %s160_s2, [#allocation4]  }
  0x24   :  { %129 = dma.done.wait [#allocation4], 256  }
  0x25   :  { %130 = vsyncadd [#allocation4], 4294967040 }
  0x26   :  { %59 = vsyncpa [#allocation3], 1 }
  0x27   :  { %60 = vsyncpa [#allocation6], 1 }
  0x28   :  { %61 = vsyncpa [#allocation4], 1 }

</bundles_post_ra>
